<compile_context>
chip_gen: v5e
topology: v5e:2x2
jax: 0.10.0
libtpu: 0.0.40
codegen_flags: <defaults>
</compile_context>

<pallas_src>
import functools

import jax
import jax.numpy as jnp
from jax import lax
from jax.experimental import pallas as pl
from jax.experimental.pallas import tpu as pltpu


# ---------------------------------------------------------------------------
# Small helpers
# ---------------------------------------------------------------------------
def _pick_tile(dim, target, multiple):
    """Largest divisor of `dim` that is <= target and a multiple of `multiple`.
    Falls back to the full dim (a full-extent block is always legal)."""
    if dim <= target:
        return dim
    for t in range(target, 0, -1):
        if dim % t == 0 and t % multiple == 0:
            return t
    return dim


def _vmem_capacity():
    """Physical per-core VMEM bytes (generation-aware); conservative fallback."""
    try:
        cap = getattr(pltpu.get_tpu_info(), "vmem_capacity_bytes", None)
        if cap:
            return int(cap)
    except Exception:
        pass
    return 128 << 20  # v5e/v6e physical size; v7x handled via get_tpu_info


def _pick_head_chunk(heads, dim_head, batch, tq, tk, vmem_budget):
    """Pick the number of heads processed per grid step.

    Constraints:
      * hc*dim_head must be a multiple of 128 (lane-dense) or hc == heads
        (full-extent block) for BlockSpec legality.
      * prefer the largest hc (fewer grid steps / bigger DMAs) that still
        gives >= 2 total parallel iterations (v7x megacore) and fits VMEM.
    """
    legal = [hc for hc in range(heads, 0, -1)
             if heads % hc == 0 and ((hc * dim_head) % 128 == 0 or hc == heads)]

    def vmem_ok(hc):
        chunk = hc * dim_head
        tiles = 2 * 2 * (2 * tq * chunk + 2 * tk * chunk)        # dbl-buffered bf16 q/o + k/v
        scratch = 4 * hc * (tq * dim_head + 2 * tq)              # f32 acc/m/l
        temps = 2 * 4 * tq * tk                                  # f32 s/p temporaries
        return tiles + scratch + temps < vmem_budget

    fits = [hc for hc in legal if vmem_ok(hc)] or [legal[-1]]
    for hc in fits:                       # prefer >=2 grid iterations (megacore)
        if batch * (heads // hc) >= 2:
            return hc
    return fits[0]


def _mosaic_params(dim_semantics, live_tile_bytes):
    """CompilerParams with a scoped-VMEM limit sized from the live tiles,
    capped at ~72% of the physical per-core VMEM (generation-aware)."""
    cap = int(0.72 * _vmem_capacity())
    vmem = int(2.5 * live_tile_bytes) + (8 << 20)
    vmem = max(16 << 20, min(vmem, cap))
    return pltpu.CompilerParams(
        dimension_semantics=tuple(dim_semantics),
        vmem_limit_bytes=vmem,
    )


# ---------------------------------------------------------------------------
# Kernels
# ---------------------------------------------------------------------------
def _qkv_kernel(x_ref, wq_ref, wk_ref, wv_ref, q_ref, k_ref, v_ref, *, scale):
    # x_ref: (1, tn, D) f32; w*_ref: (D, tc) bf16; q/k/v_ref: (1, tn, tc) bf16
    x = x_ref[0].astype(jnp.bfloat16)
    q = jnp.dot(x, wq_ref[...], preferred_element_type=jnp.float32)
    q_ref[0] = (q * scale).astype(q_ref.dtype)          # fold softmax scale into q
    k_ref[0] = jnp.dot(x, wk_ref[...], preferred_element_type=jnp.float32).astype(k_ref.dtype)
    v_ref[0] = jnp.dot(x, wv_ref[...], preferred_element_type=jnp.float32).astype(v_ref.dtype)


def _flash_attn_kernel(q_ref, k_ref, v_ref, o_ref, m_ref, l_ref, acc_ref,
                       *, n_heads, dim_head):
    # q/o refs: (1, tq, n_heads*dim_head) bf16, k/v refs: (1, tk, n_heads*dim_head) bf16
    # scratch: m/l (n_heads, tq, 1) f32, acc (n_heads, tq, dim_head) f32
    ki = pl.program_id(3)

    @pl.when(ki == 0)
    def _init():
        m_ref[...] = jnp.full(m_ref.shape, -jnp.inf, dtype=m_ref.dtype)
        l_ref[...] = jnp.zeros(l_ref.shape, dtype=l_ref.dtype)
        acc_ref[...] = jnp.zeros(acc_ref.shape, dtype=acc_ref.dtype)

    for h in range(n_heads):  # small, unrolled
        sl = slice(h * dim_head, (h + 1) * dim_head)
        q = q_ref[0, :, sl]                              # (tq, Dh) bf16, pre-scaled
        k = k_ref[0, :, sl]                              # (tk, Dh) bf16
        v = v_ref[0, :, sl]                              # (tk, Dh) bf16
        # s = q @ k^T, contracting last axes directly (no explicit k.T relayout)
        s = lax.dot_general(q, k, (((1,), (1,)), ((), ())),
                            preferred_element_type=jnp.float32)   # (tq, tk) f32
        m_prev = m_ref[h]                                # (tq, 1)
        m_new = jnp.maximum(m_prev, jnp.max(s, axis=-1, keepdims=True))
        alpha = jnp.exp(m_prev - m_new)                  # rescale of running stats
        p = jnp.exp(s - m_new)                           # (tq, tk) f32
        l_ref[h] = alpha * l_ref[h] + jnp.sum(p, axis=-1, keepdims=True)
        acc_ref[h] = alpha * acc_ref[h] + jnp.dot(
            p.astype(v.dtype), v, preferred_element_type=jnp.float32)
        m_ref[h] = m_new

    @pl.when(ki == pl.num_programs(3) - 1)
    def _finalize():
        for h in range(n_heads):
            sl = slice(h * dim_head, (h + 1) * dim_head)
            inv = pl.reciprocal(l_ref[h], approx=True)   # EUP slot, ~free
            o_ref[0, :, sl] = (acc_ref[h] * inv).astype(o_ref.dtype)


def _out_proj_kernel(x_ref, w_ref, b_ref, o_ref):
    # x_ref: (1, tn, I) bf16; w_ref: (I, td) bf16; b_ref: (1, td) f32; o_ref: (1, tn, td)
    acc = jnp.dot(x_ref[0], w_ref[...], preferred_element_type=jnp.float32)
    o_ref[0] = (acc + b_ref[...].astype(jnp.float32)).astype(o_ref.dtype)


# ---------------------------------------------------------------------------
# pallas_call wrappers
# ---------------------------------------------------------------------------
def _qkv_proj(x, wq, wk, wv, scale):
    B, N, D = x.shape
    I = wq.shape[1]
    tn = _pick_tile(N, 512, 8)
    tc = _pick_tile(I, 512, 128)
    # N innermost -> weight tiles stay VMEM-resident across the N loop.
    grid = (B, I // tc, N // tn)

    x_spec = pl.BlockSpec((1, tn, D), lambda b, j, i: (b, i, 0))
    w_spec = pl.BlockSpec((D, tc), lambda b, j, i: (0, j))
    o_spec = pl.BlockSpec((1, tn, tc), lambda b, j, i: (b, i, j))

    live = tn * D * x.dtype.itemsize + (3 * D * tc + 3 * tn * tc) * 2
    cost = pl.CostEstimate(
        flops=int(2 * B * N * D * 3 * I),
        transcendentals=0,
        bytes_accessed=int(B * N * D * x.dtype.itemsize + (3 * D * I + 3 * B * N * I) * 2),
    )
    out_sds = jax.ShapeDtypeStruct((B, N, I), jnp.bfloat16)
    return pl.pallas_call(
        functools.partial(_qkv_kernel, scale=scale),
        out_shape=(out_sds, out_sds, out_sds),
        grid=grid,
        in_specs=[x_spec, w_spec, w_spec, w_spec],
        out_specs=(o_spec, o_spec, o_spec),
        compiler_params=_mosaic_params(("parallel", "parallel", "parallel"), live),
        cost_estimate=cost,
    )(x, wq, wk, wv)


def _attention_core(q, k, v, heads, dim_head):
    B, N, I = q.shape
    tq = _pick_tile(N, 256, 8)
    tk = _pick_tile(N, 512, 8)
    hc = _pick_head_chunk(heads, dim_head, B, tq, tk, int(0.5 * _vmem_capacity()))
    chunk = hc * dim_head
    grid = (B, heads // hc, N // tq, N // tk)   # kv axis innermost, "arbitrary"

    q_spec = pl.BlockSpec((1, tq, chunk), lambda b, h, qi, ki: (b, qi, h))
    kv_spec = pl.BlockSpec((1, tk, chunk), lambda b, h, qi, ki: (b, ki, h))
    o_spec = pl.BlockSpec((1, tq, chunk), lambda b, h, qi, ki: (b, qi, h))

    live = (2 * tq * chunk + 2 * tk * chunk) * 2 \
        + hc * (tq * dim_head + 2 * tq) * 4 \
        + 2 * tq * tk * 4
    cost = pl.CostEstimate(
        flops=int(4 * B * heads * N * N * dim_head),
        transcendentals=int(B * heads * N * N),
        bytes_accessed=int(4 * B * N * I * 2),
    )
    return pl.pallas_call(
        functools.partial(_flash_attn_kernel, n_heads=hc, dim_head=dim_head),
        out_shape=jax.ShapeDtypeStruct((B, N, I), jnp.bfloat16),
        grid=grid,
        in_specs=[q_spec, kv_spec, kv_spec],
        out_specs=o_spec,
        scratch_shapes=[
            pltpu.VMEM((hc, tq, 1), jnp.float32),         # running max m
            pltpu.VMEM((hc, tq, 1), jnp.float32),         # running denom l
            pltpu.VMEM((hc, tq, dim_head), jnp.float32),  # running PV accumulator
        ],
        compiler_params=_mosaic_params(
            ("parallel", "parallel", "parallel", "arbitrary"), live),
        cost_estimate=cost,
    )(q, k, v)


def _out_proj(x, w, b, out_dtype):
    B, N, I = x.shape
    D = w.shape[1]
    tn = _pick_tile(N, 512, 8)
    td = _pick_tile(D, 512, 128)
    grid = (B, D // td, N // tn)

    x_spec = pl.BlockSpec((1, tn, I), lambda bi, j, i: (bi, i, 0))
    w_spec = pl.BlockSpec((I, td), lambda bi, j, i: (0, j))
    b_spec = pl.BlockSpec((1, td), lambda bi, j, i: (0, j))
    o_spec = pl.BlockSpec((1, tn, td), lambda bi, j, i: (bi, i, j))

    out_itm = jnp.dtype(out_dtype).itemsize
    live = (tn * I + I * td) * 2 + (td + tn * td) * out_itm
    cost = pl.CostEstimate(
        flops=int(2 * B * N * I * D),
        transcendentals=0,
        bytes_accessed=int((B * N * I + I * D) * 2 + (D + B * N * D) * out_itm),
    )
    return pl.pallas_call(
        _out_proj_kernel,
        out_shape=jax.ShapeDtypeStruct((B, N, D), out_dtype),
        grid=grid,
        in_specs=[x_spec, w_spec, b_spec],
        out_specs=o_spec,
        compiler_params=_mosaic_params(("parallel", "parallel", "parallel"), live),
        cost_estimate=cost,
    )(x, w, b)


def attention_forward(x, params, *, heads):
    """Forward pass matching the PyTorch Attention module (dropout=0)."""
    # Weights cast to bf16 once (one-time XLA convert; halves weight DMA bytes,
    # avoids per-grid-step casts inside the kernels).
    wq = params["w_q"].astype(jnp.bfloat16)
    wk = params["w_k"].astype(jnp.bfloat16)
    wv = params["w_v"].astype(jnp.bfloat16)
    wo = params["w_out"].astype(jnp.bfloat16)
    inner_dim = wq.shape[1]
    dim_head = inner_dim // heads
    scale = float(dim_head) ** -0.5

    # qkv projection (kernel 1) -- q/k/v stay in the merged (B, N, I) layout, bf16,
    # with the softmax scale folded into q.
    q, k, v = _qkv_proj(x, wq, wk, wv, scale)

    # flash-style scaled-dot-product attention (kernel 2).
    out = _attention_core(q, k, v, heads, dim_head)    # (B, N, I) bf16

    # output projection (kernel 3); project_out is True for these hyperparams.
    return _out_proj(out, wo, params["b_out"], out_dtype=x.dtype)


# ---------------------------------------------------------------------------
# Deterministic parameter init (PyTorch nn.Linear default: U(-1/sqrt(fan_in), +)).
# The PyTorch to_qkv weight (D, 3I) is stored split into Wq/Wk/Wv (D, I) each —
# identical semantics (concatenation along the output axis).
# ---------------------------------------------------------------------------
def init_params(key, dim, heads, dim_head, dtype=jnp.float32):
    inner_dim = heads * dim_head
    kq, kk, kv, kw, kb = jax.random.split(key, 5)
    bound_qkv = 1.0 / (dim ** 0.5)
    bound_out = 1.0 / (inner_dim ** 0.5)
    u = lambda k, shape, b: jax.random.uniform(k, shape, dtype, -b, b)
    return {
        "w_q": u(kq, (dim, inner_dim), bound_qkv),
        "w_k": u(kk, (dim, inner_dim), bound_qkv),
        "w_v": u(kv, (dim, inner_dim), bound_qkv),
        "w_out": u(kw, (inner_dim, dim), bound_out),
        "b_out": u(kb, (1, dim), bound_out),
    }


# ---------------------------------------------------------------------------
# Pure-JAX reference for sanity checking (f32 end-to-end)
# ---------------------------------------------------------------------------
def attention_reference(x, params, *, heads):
    B, N, D = x.shape
    w_qkv = jnp.concatenate([params["w_q"], params["w_k"], params["w_v"]], axis=1)
    inner_dim = w_qkv.shape[1] // 3
    dim_head = inner_dim // heads
    scale = float(dim_head) ** -0.5
    qkv = x @ w_qkv
    q, k, v = jnp.split(qkv, 3, axis=-1)
    sh = lambda t: t.reshape(B, N, heads, dim_head).transpose(0, 2, 1, 3)
    q, k, v = map(sh, (q, k, v))
    dots = jnp.einsum("bhnd,bhmd->bhnm", q, k) * scale
    attn = jax.nn.softmax(dots, axis=-1)
    out = jnp.einsum("bhnm,bhmd->bhnd", attn, v)
    out = out.transpose(0, 2, 1, 3).reshape(B, N, inner_dim)
    return out @ params["w_out"] + params["b_out"]


if __name__ == "__main__":
    # Small shapes consistent with the module: B=2, N=8 tokens, dim=32,
    # heads=4, dim_head=8 -> inner_dim=32.
    B, N, dim = 2, 8, 32
    heads, dim_head = 4, 8

    key = jax.random.PRNGKey(0)
    kx, kp = jax.random.split(key)
    x = jax.random.normal(kx, (B, N, dim), jnp.float32)
    params = init_params(kp, dim, heads, dim_head)

    out = jax.block_until_ready(attention_forward(x, params, heads=heads))

    ref = attention_reference(x, params, heads=heads)
    assert out.shape == (B, N, dim)
    # tolerance loosened for the bf16 MXU path + pl.reciprocal(approx=True)
    assert jnp.allclose(out, ref, atol=3e-2, rtol=3e-2), "mismatch vs reference"

    print("KERNEL_OK")
</pallas_src>

<mosaic_0001>
module attributes {stable_mosaic.version = 11 : i64} {
  func.func @_qkv_kernel(%arg0: i32, %arg1: i32, %arg2: i32, %arg3: memref<1x8x32xf32, #tpu.memory_space<vmem>>, %arg4: memref<32x32xbf16, #tpu.memory_space<vmem>>, %arg5: memref<32x32xbf16, #tpu.memory_space<vmem>>, %arg6: memref<32x32xbf16, #tpu.memory_space<vmem>>, %arg7: memref<1x8x32xbf16, #tpu.memory_space<vmem>>, %arg8: memref<1x8x32xbf16, #tpu.memory_space<vmem>>, %arg9: memref<1x8x32xbf16, #tpu.memory_space<vmem>>) attributes {dimension_semantics = [#tpu.dimension_semantics<parallel>, #tpu.dimension_semantics<parallel>, #tpu.dimension_semantics<parallel>], iteration_bounds = array<i64: 2, 1, 1>, scalar_prefetch = 0 : i64, scratch_operands = 0 : i64, tpu.core_type = #tpu.core_type<tc>, window_params = [{transform_indices = @transform_0, window_bounds = array<i64: 1, 8, 32>}, {transform_indices = @transform_1, window_bounds = array<i64: 32, 32>}, {transform_indices = @transform_2, window_bounds = array<i64: 32, 32>}, {transform_indices = @transform_3, window_bounds = array<i64: 32, 32>}, {transform_indices = @transform_4, window_bounds = array<i64: 1, 8, 32>}, {transform_indices = @transform_5, window_bounds = array<i64: 1, 8, 32>}, {transform_indices = @transform_6, window_bounds = array<i64: 1, 8, 32>}]} {
    %c0 = arith.constant 0 : index
    %c0_0 = arith.constant 0 : index
    %c0_1 = arith.constant 0 : index
    %0 = vector.load %arg3[%c0, %c0_0, %c0_1] : memref<1x8x32xf32, #tpu.memory_space<vmem>>, vector<1x8x32xf32>
    %1 = vector.shape_cast %0 : vector<1x8x32xf32> to vector<8x32xf32>
    %2 = arith.truncf %1 : vector<8x32xf32> to vector<8x32xbf16>
    %c0_2 = arith.constant 0 : index
    %c0_3 = arith.constant 0 : index
    %3 = vector.load %arg4[%c0_2, %c0_3] : memref<32x32xbf16, #tpu.memory_space<vmem>>, vector<32x32xbf16>
    %cst = arith.constant dense<0.000000e+00> : vector<8x32xf32>
    %4 = tpu.matmul %2, %3, %cst {dimension_numbers = #tpu.dot_dimension_numbers<[1], [0], [0], [1], [0, 0, 1, 1], [], []>} : vector<8x32xbf16>, vector<32x32xbf16>, vector<8x32xf32> -> vector<8x32xf32>
    %cst_4 = arith.constant 0.353553385 : f32
    %5 = vector.broadcast %cst_4 : f32 to vector<8x32xf32>
    %6 = arith.mulf %4, %5 : vector<8x32xf32>
    %7 = arith.truncf %6 : vector<8x32xf32> to vector<8x32xbf16>
    %c0_5 = arith.constant 0 : index
    %c0_6 = arith.constant 0 : index
    %c0_7 = arith.constant 0 : index
    %8 = vector.load %arg7[%c0_5, %c0_6, %c0_7] : memref<1x8x32xbf16, #tpu.memory_space<vmem>>, vector<1x8x32xbf16>
    %9 = vector.shape_cast %8 : vector<1x8x32xbf16> to vector<8x32xbf16>
    %10 = vector.shape_cast %7 : vector<8x32xbf16> to vector<1x8x32xbf16>
    tpu.vector_store %arg7[%c0_5, %c0_6, %c0_7], %10 {strides = array<i32>} : memref<1x8x32xbf16, #tpu.memory_space<vmem>>, vector<1x8x32xbf16>,
    %c0_8 = arith.constant 0 : index
    %c0_9 = arith.constant 0 : index
    %11 = vector.load %arg5[%c0_8, %c0_9] : memref<32x32xbf16, #tpu.memory_space<vmem>>, vector<32x32xbf16>
    %cst_10 = arith.constant dense<0.000000e+00> : vector<8x32xf32>
    %12 = tpu.matmul %2, %11, %cst_10 {dimension_numbers = #tpu.dot_dimension_numbers<[1], [0], [0], [1], [0, 0, 1, 1], [], []>} : vector<8x32xbf16>, vector<32x32xbf16>, vector<8x32xf32> -> vector<8x32xf32>
    %13 = arith.truncf %12 : vector<8x32xf32> to vector<8x32xbf16>
    %c0_11 = arith.constant 0 : index
    %c0_12 = arith.constant 0 : index
    %c0_13 = arith.constant 0 : index
    %14 = vector.load %arg8[%c0_11, %c0_12, %c0_13] : memref<1x8x32xbf16, #tpu.memory_space<vmem>>, vector<1x8x32xbf16>
    %15 = vector.shape_cast %14 : vector<1x8x32xbf16> to vector<8x32xbf16>
    %16 = vector.shape_cast %13 : vector<8x32xbf16> to vector<1x8x32xbf16>
    tpu.vector_store %arg8[%c0_11, %c0_12, %c0_13], %16 {strides = array<i32>} : memref<1x8x32xbf16, #tpu.memory_space<vmem>>, vector<1x8x32xbf16>,
    %c0_14 = arith.constant 0 : index
    %c0_15 = arith.constant 0 : index
    %17 = vector.load %arg6[%c0_14, %c0_15] : memref<32x32xbf16, #tpu.memory_space<vmem>>, vector<32x32xbf16>
    %cst_16 = arith.constant dense<0.000000e+00> : vector<8x32xf32>
    %18 = tpu.matmul %2, %17, %cst_16 {dimension_numbers = #tpu.dot_dimension_numbers<[1], [0], [0], [1], [0, 0, 1, 1], [], []>} : vector<8x32xbf16>, vector<32x32xbf16>, vector<8x32xf32> -> vector<8x32xf32>
    %19 = arith.truncf %18 : vector<8x32xf32> to vector<8x32xbf16>
    %c0_17 = arith.constant 0 : index
    %c0_18 = arith.constant 0 : index
    %c0_19 = arith.constant 0 : index
    %20 = vector.load %arg9[%c0_17, %c0_18, %c0_19] : memref<1x8x32xbf16, #tpu.memory_space<vmem>>, vector<1x8x32xbf16>
    %21 = vector.shape_cast %20 : vector<1x8x32xbf16> to vector<8x32xbf16>
    %22 = vector.shape_cast %19 : vector<8x32xbf16> to vector<1x8x32xbf16>
    tpu.vector_store %arg9[%c0_17, %c0_18, %c0_19], %22 {strides = array<i32>} : memref<1x8x32xbf16, #tpu.memory_space<vmem>>, vector<1x8x32xbf16>,
    return
  }
  func.func @transform_0(%arg0: i32, %arg1: i32, %arg2: i32) -> (i32, i32, i32) {
    %c0_i32 = arith.constant 0 : i32
    %c0_i32_0 = arith.constant 0 : i32
    return %arg0, %arg2, %c0_i32 : i32, i32, i32
  }
  func.func @transform_1(%arg0: i32, %arg1: i32, %arg2: i32) -> (i32, i32) {
    %c0_i32 = arith.constant 0 : i32
    %c0_i32_0 = arith.constant 0 : i32
    return %c0_i32, %arg1 : i32, i32
  }
  func.func @transform_2(%arg0: i32, %arg1: i32, %arg2: i32) -> (i32, i32) {
    %c0_i32 = arith.constant 0 : i32
    %c0_i32_0 = arith.constant 0 : i32
    return %c0_i32, %arg1 : i32, i32
  }
  func.func @transform_3(%arg0: i32, %arg1: i32, %arg2: i32) -> (i32, i32) {
    %c0_i32 = arith.constant 0 : i32
    %c0_i32_0 = arith.constant 0 : i32
    return %c0_i32, %arg1 : i32, i32
  }
  func.func @transform_4(%arg0: i32, %arg1: i32, %arg2: i32) -> (i32, i32, i32) {
    %c0_i32 = arith.constant 0 : i32
    return %arg0, %arg2, %arg1 : i32, i32, i32
  }
  func.func @transform_5(%arg0: i32, %arg1: i32, %arg2: i32) -> (i32, i32, i32) {
    %c0_i32 = arith.constant 0 : i32
    return %arg0, %arg2, %arg1 : i32, i32, i32
  }
  func.func @transform_6(%arg0: i32, %arg1: i32, %arg2: i32) -> (i32, i32, i32) {
    %c0_i32 = arith.constant 0 : i32
    return %arg0, %arg2, %arg1 : i32, i32, i32
  }
}

</mosaic_0001>

<bundles_post_ra>
// kernel: tpu_custom_call.1
= control target key start
LH: loop header
LB: loop body
LE: loop exit
PB: predicated region body
PF: predicated region fallthrough
CT: control target
= control target key end

     0   :  { %s1455_s0 = inlined_call_operand.hbm [shape: f32[2,8,32], index: 0, kind: input, shape index: {}]   ;;  %s1456_s1 = inlined_call_operand.hbm [shape: bf16[32,32], index: 1, kind: input, shape index: {}]   ;;  %s1457_s2 = inlined_call_operand.hbm [shape: bf16[32,32], index: 2, kind: input, shape index: {}]   ;;  %s1458_s3 = inlined_call_operand.hbm [shape: bf16[32,32], index: 3, kind: input, shape index: {}]   ;;  %s1459_s4 = inlined_call_operand.hbm [shape: bf16[2,8,32], index: 4, kind: output, shape index: {0}]   ;;  %s1460_s5 = inlined_call_operand.hbm [shape: bf16[2,8,32], index: 5, kind: output, shape index: {1}]   ;;  %s1461_s6 = inlined_call_operand.hbm [shape: bf16[2,8,32], index: 6, kind: output, shape index: {2}]  }
   0x1   :  { %1465 = sst [smem:[#allocation20_spill]] %s1455_s0 }
   0x2   :  { %1466 = sst [smem:[#allocation21_spill]] %s1456_s1 }
   0x3   :  { %1467 = sst [smem:[#allocation22_spill]] %s1457_s2 }
   0x4   :  { %12 = vsyncpa [#allocation3], 0 }
   0x5   :  { %14 = vsyncpa [#allocation3 + $0x1], 0 }
   0x6   :  { %15 = vsyncpa [#allocation6], 0 }
   0x7   :  { %16 = vsyncpa [#allocation9], 0 }
   0x8   :  { %17 = vsyncpa [#allocation4], 0 }
   0x9   :  { %19 = vsyncpa [#allocation4 + $0x1], 0 }
   0xa   :  { %20 = vsyncpa [#allocation12], 0 }
   0xb   :  { %22 = vsyncpa [#allocation12 + $0x1], 0  ;;  %s1215_s21 = smov 0   ;;  %s1217_s22 = smov 0  }
   0xc   :  { %s1219_s23 = smov 0   ;;  %s1221_s24 = smov 0  }
   0xd   :  { %s1223_s25 = smov 0   ;;  %s1225_s26 = smov 0  }
   0xe LB: > { %s1246_s27 = sadd.s32 4294967295, %s1173_s26   ;;  %p742_p0 = scmp.ge.s32.totalorder %s1173_s26, 1  ;;  %s1173_s26 = sphi %s1225_s26, %s28_s26   ;;  %s1169_s25 = sphi %s1223_s25, %s1486_s25   ;;  %s1165_s24 = sphi %s1221_s24, %s1485_s24   ;;  %s1161_s23 = sphi %s1219_s23, %s1484_s23   ;;  %s1157_s22 = sphi %s1217_s22, %s1483_s22   ;;  %s1153_s21 = sphi %s1215_s21, %s1482_s21  }
   0xf   : > { %p70_p1 = scmp.eq.s32.totalorder %s1246_s27, 0  ;;  %p248_p2 = scmp.lt.s32.totalorder %s1173_s26, 3 }
  0x10   : > { %s1468_s1 = sld [smem:[#allocation21_spill]]  ;;  %s1175_s8 = smov [#allocation5]  }
  0x11   : > { %p1254_p3 = pnand %p742_p0, %p248_p2  ;;  %s263_s9 = sshll.u32 %s1175_s8, 4  ;;  %s264_s9 = int_to_ptr.vmem [resolvable:$true] %s263_s9 }
  0x12   : > { %p746_p6 = scmp.ge.s32.totalorder %s1173_s26, 2  ;;  %s1471_s2 = sld [smem:[#allocation22_spill]] }
  0x13   : > { %p818_p4 = pneg %p1254_p3  ;;  %s1176_s14 = smov 64  }
  0x14   : > { %s1177_s15 = smov 4   ;;  %s1178_s16 = smov [#allocation7]  }
  0x15   : > { %p1262_p5 = pnand %p818_p4, %p70_p1  ;;  %s279_s17 = sshll.u32 %s1178_s16, 4  ;;  %s280_s17 = int_to_ptr.vmem [resolvable:$true] %s279_s17 }
  0x16   : > { %s261_s30 = sshll.u32 %s1468_s1, 4  ;;  %s293_s20 = sshll.u32 %s1458_s3, 4  ;;  %s262_s30 = int_to_ptr.hbm [resolvable:$true] %s261_s30  ;;  %s294_s20 = int_to_ptr.hbm [resolvable:$true] %s293_s20 }
  0x17   : > { %821 = dma.hbm_to_vmem [thread:$0]  (!%p1262_p5), %s262_s30, 256, %s264_s9, [#allocation6], %s1176_s14, %s1176_s14, %s1177_s15  }
  0x18   : > { %s277_s13 = sshll.u32 %s1471_s2, 4  ;;  %s1179_s28 = smov [#allocation8]   ;;  %s278_s13 = int_to_ptr.hbm [resolvable:$true] %s277_s13 }
  0x19   : > { %824 = dma.hbm_to_vmem [thread:$0]  (!%p1262_p5), %s278_s13, 256, %s280_s17, [#allocation6], %s1176_s14, %s1176_s14, %s1177_s15  }
  0x1a   : > { %s295_s29 = sshll.u32 %s1179_s28, 4  ;;  %s1462_s30 = sadd.s32 4294967294, %s1173_s26   ;;  %s296_s29 = int_to_ptr.vmem [resolvable:$true] %s295_s29 }
  0x1b   : > { %827 = dma.hbm_to_vmem [thread:$0]  (!%p1262_p5), %s294_s20, 256, %s296_s29, [#allocation9], %s1176_s14, %s1176_s14, %s1177_s15  }
  0x1c   : > { %s47_s8 = sadd.s32 1, %s1169_s25  ;;  %s56_s9 = sadd.s32 1, %s1161_s23 }
  0x1d   : > { %p49_p7 = scmp.ge.s32.totalorder %s47_s8, 2  ;;  %p63_p8 = scmp.ne.s32.totalorder %s1161_s23, %s1157_s22 }
  0x1e   : > { %p64_p9 = scmp.eq.s32.totalorder %s1173_s26, 0  ;;  %p69_p10 = scmp.ne.s32.totalorder %s1157_s22, %s1153_s21 }
  0x1f   : > { %s1488_s8 = smov (%p49_p7, %s47_s8), 0  ;;  %p175_p13 = scmp.eq.s32.totalorder %s1246_s27, 1 }
  0x20   : > { %p1289_p11 = por %p64_p9, %p63_p8  ;;  %p1295_p12 = por %p70_p1, %p69_p10 }
  0x21   : > { %s51_s12 = ssub.s32 %s1169_s25, %s1488_s8  ;;  %p181_p2 = scmp.eq.s32.totalorder %s1462_s30, 1 }
  0x22   : > { %p54_p0 = scmp.eq.s32.totalorder %s51_s12, 0  ;;  %p1304_p4 = por %p175_p13, %p63_p8 }
  0x23   : > { %p845_p5 = scmp.lt.s32.totalorder %s1173_s26, 2  ;;  %p1312_p7 = por %p181_p2, %p69_p10 }
  0x24   : > { %s1310_s14 = scalar_select %p54_p0, %s1161_s23, %s56_s9  }
  0x25   : > { %s309_s16 = sand.u32 1, %s1161_s23   ;;  %s748_s18 = sshll.u32 %s1169_s25, 3 }
  0x26   : > { %s747_s17 = sshll.u32 %s309_s16, 3  ;;  %s1476_s0 = sld [smem:[#allocation20_spill]] }
  0x27   : > { %s313_s29 = scalar_lea.vmem [#allocation2], %s747_s17  ;;  %p829_p8 = pnand %p845_p5, %p1289_p11 }
  0x28   : > { %s322_s12 = sshll.u32 %s313_s29, 4  ;;  %s310_s9 = scalar_lea.sflag [#allocation3], %s309_s16  ;;  %s323_s12 = int_to_ptr.vmem [resolvable:$true] %s322_s12 }
  0x2a   : > { %331 = sbr.rel (%p1254_p3) target bundleno = 219 (0xdb), region = 36 }
  0x2c   : > { %s318_s28 = scalar_lea.hbm %s1476_s0, %s748_s18 }
  0x2d   : > { %s320_s30 = sshll.u32 %s318_s28, 4  ;;  %s321_s30 = int_to_ptr.hbm [resolvable:$true] %s320_s30 }
  0x2e   : > { %831 = dma.hbm_to_vmem [thread:$0]  (!%p829_p8), %s321_s30, 128, %s323_s12, %s310_s9  }
  0x2f   : > { %s1326_s1 = sand.u32 1, %s1157_s22  }
  0x30   : > { %s750_s19 = sshll.u32 %s1326_s1, 3  ;;  %s334_s18 = scalar_lea.sflag [#allocation3], %s1326_s1 }
  0x31   : > { %s337_s17 = scalar_lea.vmem [#allocation2], %s750_s19 }
  0x32   : > { %1132 = dma.done.wait (%p1295_p12), %s334_s18, 128  }
  0x33   : > { %1134 = vsyncadd (%p1295_p12), %s334_s18, 4294967168 }
  0x34   : > { %1136 = dma.done.wait (%p70_p1), [#allocation6], 512  }
  0x35   : > { %1138 = vsyncadd (%p70_p1), [#allocation6], 4294966784 }
  0x36   : > { %1140 = dma.done.wait (%p70_p1), [#allocation9], 256  }
  0x37   : > { %1142 = vsyncadd (%p70_p1), [#allocation9], 4294967040  ;;  %v793_v0 = vld [vmem:[#allocation5 + $0x8] sm:$0xff]  ;;  %v795_v1 = vld [vmem:[#allocation7 + $0x8] sm:$0xff]  ;;  %vm411_vm0 = vcmask 261120   ;;  %s1343_s7 = sshll.u32 %s1165_s24, 2 }
  0x38   : > { %v797_v2 = vld [vmem:[#allocation8 + $0x8] sm:$0xff]  ;;  %421 = vmatpush.bf16.msra.mxu0 %v793_v0  ;;  %454 = vmatpush.bf16.msra.mxu1 %v795_v1  ;;  %v792_v3 = vld [vmem:[#allocation5] sm:$0xff]  ;;  %v794_v4 = vld [vmem:[#allocation7] sm:$0xff]  ;;  %s1346_s30 = sshll.u32 %s1326_s1, 2  ;;  %s499_s11 = sand.u32 1, %s1246_s27   ;;  %vm430_vm1 = vcmask 257024  }
  0x39   : > { %v393_v5 = vld [vmem:[%s337_s17] sm:$0xff]  ;;  %485 = vmatpush.bf16.msra.mxu2 %v797_v2  ;;  %v796_v6 = vld [vmem:[#allocation8] sm:$0xff]  ;;  %s533_s20 = scalar_lea.hbm %s1460_s5, %s1343_s7  ;;  %s384_s28 = scalar_lea.vmem [#allocation11], %s1346_s30 }
  0x3a   : > { %v394_v7 = vpack.c.bf16 %v393_v5, %v393_v5  ;;  %s1354_s29 = sshll.u32 %s384_s28, 4  ;;  %s517_s24 = scalar_lea.hbm %s1459_s4, %s1343_s7  ;;  %s536_s29 = int_to_ptr.vmem [resolvable:$true] %s1354_s29 }
  0x3b   : > { %s1360_s19 = sshll.u32 %s533_s20, 4  ;;  %s1463_s18 = scalar_lea.vmem [#allocation10], %s1346_s30  ;;  %s538_s19 = int_to_ptr.hbm [resolvable:$true] %s1360_s19 }
  0x3c   : > { %422 = vmatpush.bf16.msra.mxu0 %v792_v3  ;;  %455 = vmatpush.bf16.msra.mxu1 %v794_v4  ;;  %s1365_s17 = sshll.u32 %s1463_s18, 4  ;;  %s1368_s27 = sshll.u32 %s517_s24, 4  ;;  %s522_s27 = int_to_ptr.hbm [resolvable:$true] %s1368_s27 }
  0x3d   : > { %486 = vmatpush.bf16.msra.mxu2 %v796_v6  ;;  %1477 = sst [smem:[#allocation19_spill]] %s1365_s17  ;;  %s549_s20 = scalar_lea.hbm %s1461_s6, %s1343_s7 }
  0x3e   : > { %s1378_s12 = scalar_lea.sflag [#allocation12], %s499_s11  ;;  %s1037_s9 = sshra.s32 %s538_s19, 4  ;;  %s1038_s9 = int_to_ptr.hbm [resolvable:$true] %s1037_s9 }
  0x3f   : > { %765 = vmatmul.msk.bf16.vlgmr.msra.gmra.mxu0 %vm411_vm0, %v394_v7  ;;  %774 = vmatmul.msk.bf16.vlgmr.msra.gmra.mxu1 %vm411_vm0, %v394_v7  ;;  %s1039_s18 = scalar_lea.hbm %s1038_s9, 4  ;;  %s1043_s17 = scalar_lea.hbm %s1460_s5, 8 }
  0x40   : > { %783 = vmatmul.msk.bf16.vlgmr.msra.gmra.mxu2 %vm411_vm0, %v394_v7  ;;  %p1040_p1 = scmp.ne.s32.totalorder %s1038_s9, %s1039_s18  ;;  %p1044_p10 = scmp.lt.s32.totalorder %s1038_s9, %s1460_s5 }
  0x41   : > { %p1045_p11 = scmp.lt.s32.totalorder %s1043_s17, %s1039_s18 }
  0x42   : > { %p1041_p3 = pnand %p1040_p1, %p1304_p4 }
  0x43   : > { %p1046_p12 = por %p1045_p11, %p1044_p10 }
  0x44   : > { %p1042_p9 = pneg %p1041_p3 }
  0x46   : > { %p1047_p13 = pnand %p1046_p12, %p1042_p9 }
  0xbc   : > { %v424_v8 = vpop.f32.mrf.mxu0  ;;  %v457_v9 = vpop.f32.mrf.mxu1 }
  0xbd   : > { %v428_v10 = vmul.f32 0.35355338, %v424_v8  ;;  %v461_v11 = vpack.c.bf16 %v457_v9, %v457_v9 }
  0xbf   : > { %v429_v12 = vpack.c.bf16 %v428_v10, %v428_v10  ;;  %462 = vst.msk [vmem:[%s384_s28] sm:$0xf] %vm430_vm1, %v461_v11 }
  0xc0   : > { %1050 = shalt.err (!%p1047_p13)
}
  0xc1   : > { %813 = dma.vmem_to_hbm [thread:$0]  (%p1304_p4), %s536_s29, 64, %s538_s19, %s1378_s12  }
  0xc2   : > { %s1478_s0 = scalar_lea.vmem [#allocation10], %s1346_s30  ;;  %s391_s7 = scalar_lea.vmem [#allocation13], %s1346_s30 }
  0xc3   : > { %431 = vst.msk [vmem:[%s1478_s0] sm:$0xf] %vm430_vm1, %v429_v12  ;;  %s1395_s11 = sshll.u32 %s391_s7, 4  ;;  %s1397_s2 = sshll.u32 %s549_s20, 4  ;;  %s552_s11 = int_to_ptr.vmem [resolvable:$true] %s1395_s11  ;;  %s554_s2 = int_to_ptr.hbm [resolvable:$true] %s1397_s2 }
  0xc4   : > { %s495_s28 = scalar_lea.sflag [#allocation4], %s1326_s1  ;;  %s1065_s18 = sshra.s32 %s522_s27, 4  ;;  %s1066_s18 = int_to_ptr.hbm [resolvable:$true] %s1065_s18 }
  0xc5   : > { %s1067_s17 = scalar_lea.hbm %s1066_s18, 4  ;;  %s1071_s29 = scalar_lea.hbm %s1459_s4, 8 }
  0xc6   : > { %p1068_p0 = scmp.ne.s32.totalorder %s1066_s18, %s1067_s17  ;;  %p1072_p8 = scmp.lt.s32.totalorder %s1066_s18, %s1459_s4 }
  0xc7   : > { %p1073_p1 = scmp.lt.s32.totalorder %s1071_s29, %s1067_s17 }
  0xc8   : > { %p1069_p2 = pnand %p1068_p0, %p1304_p4 }
  0xc9   : > { %p1074_p3 = por %p1073_p1, %p1072_p8 }
  0xca   : > { %p1070_p5 = pneg %p1069_p2 }
  0xcc   : > { %p1075_p9 = pnand %p1074_p3, %p1070_p5 }
  0xce   : > { %1078 = shalt.err (!%p1075_p9)
}
  0xcf   : > { %s1479_s1 = sld [smem:[#allocation19_spill]]  ;;  %v488_v13 = vpop.f32.mrf.mxu2  ;;  %v426_v15 = vpop.f32.mrf.mxu0  ;;  %s1093_s20 = sshra.s32 %s554_s2, 4  ;;  %s1094_s20 = int_to_ptr.hbm [resolvable:$true] %s1093_s20 }
  0xd0   : > { %v492_v14 = vpack.c.bf16 %v488_v13, %v488_v13  ;;  %v459_v16 = vpop.f32.mrf.mxu1  ;;  %s1095_s10 = scalar_lea.hbm %s1094_s20, 4  ;;  %s1099_s17 = scalar_lea.hbm %s1461_s6, 8 }
  0xd1   : > { %p1096_p10 = scmp.ne.s32.totalorder %s1094_s20, %s1095_s10  ;;  %p1100_p13 = scmp.lt.s32.totalorder %s1094_s20, %s1461_s6 }
  0xd2   : > { %493 = vst.msk [vmem:[%s391_s7] sm:$0xf] %vm430_vm1, %v492_v14  ;;  %p1101_p0 = scmp.lt.s32.totalorder %s1099_s17, %s1095_s10 }
  0xd3   : > { %p1097_p11 = pnand %p1096_p10, %p1304_p4 }
  0xd4   : > { %p1102_p2 = por %p1101_p0, %p1100_p13 }
  0xd5   : > { %s1480_s30 = int_to_ptr.vmem [resolvable:$true] %s1479_s1  ;;  %p1098_p12 = pneg %p1097_p11 }
  0xd6   : > { %812 = dma.vmem_to_hbm [thread:$0]  (%p1304_p4), %s1480_s30, 64, %s522_s27, %s495_s28  }
  0xd7   : > { %p1103_p5 = pnand %p1102_p2, %p1098_p12 }
  0xd9   : > { %1106 = shalt.err (!%p1103_p5)
}
  0xda   : > { %814 = dma.vmem_to_hbm [thread:$0]  (%p1304_p4), %s552_s11, 64, %s554_s2, %s1378_s12   ;;  %v490_v17 = vpop.f32.mrf.mxu2 }
  0xdb PF: > { %s565_s7 = sand.u32 1, %s1153_s21   ;;  %p833_p8 = pnand %p746_p6, %p1312_p7 }
  0xdc   : > { %s566_s16 = scalar_lea.sflag [#allocation4], %s565_s7 }
  0xdd   : > { %p834_p1 = pneg %p833_p8 }
  0xdf   : > { %1144 = dma.done.wait (%p834_p1), %s566_s16, 64  }
  0xe0   : > { %1146 = vsyncadd (%p834_p1), %s566_s16, 4294967232  ;;  %s1481_s9 = sadd.s32 4294967294, %s1173_s26  }
  0xe1   : > { %s575_s29 = sand.u32 1, %s1481_s9  }
  0xe2   : > { %s576_s19 = scalar_lea.sflag [#allocation12], %s575_s29 }
  0xe3   : > { %1148 = dma.done.wait (%p834_p1), %s576_s19, 128  }
  0xe4   : > { %1150 = vsyncadd (%p834_p1), %s576_s19, 4294967168  ;;  %s28_s26 = sadd.s32 1, %s1173_s26   ;;  %s1482_s21 = smov %s1157_s22 }
  0xe5   : > { %p25_p4 = scmp.ge.s32.totalorder %s28_s26, 4   ;;  %s1483_s22 = smov %s1161_s23 }
  0xe6   : > { %s1484_s23 = smov %s1310_s14  ;;  %s1485_s24 = smov %s1169_s25 }
  0xe7   : > { %s1486_s25 = smov %s1488_s8  ;;  %27 = sbr.rel (!%p25_p4) target bundleno = 14 (0xe), region = 128 }
  0xec   :  { %592 = vsyncpa [#allocation3], 1 }
  0xed   :  { %594 = vsyncpa [#allocation3 + $0x1], 1 }
  0xee   :  { %595 = vsyncpa [#allocation6], 1 }
  0xef   :  { %596 = vsyncpa [#allocation9], 1 }
  0xf0   :  { %597 = vsyncpa [#allocation4], 1 }
  0xf1   :  { %599 = vsyncpa [#allocation4 + $0x1], 1 }
  0xf2   :  { %600 = vsyncpa [#allocation12], 1 }
  0xf3   :  { %602 = vsyncpa [#allocation12 + $0x1], 1 }

</bundles_post_ra>
